<compile_context>
chip_gen: v6e
topology: v6e:2x2x1
jax: 0.10.0
libtpu: 0.0.40
codegen_flags: <defaults>
</compile_context>

<pallas_src>
import jax
import jax.numpy as jnp
from jax.experimental import pallas as pl
from jax.experimental.pallas import tpu as pltpu

_LANES = 128  # vreg lane width — trailing axis is the lane axis.


def _round_up(x, m):
    return ((x + m - 1) // m) * m


def _sublane_pack(dtype):
    # Minimum sublane packing so vregs stay full and stores are unmasked:
    # 8 rows for 4-byte dtypes, 16 for bf16/fp16, 32 for int8/fp8.
    itemsize = jnp.dtype(dtype).itemsize
    return max(8, 32 // max(itemsize, 1))


def _vmem_capacity_bytes():
    # Query the chip (v5e/v6e: 128 MiB, v7x: 64 MiB per TC); fall back to the
    # most conservative budget if the query is unavailable.
    try:
        info = pltpu.get_tpu_info()
        cap = int(getattr(info, "vmem_capacity_bytes", 0))
        if cap > 0:
            return cap
    except Exception:
        pass
    return 64 << 20


def _plan_tiling(rows, feat, dtype, block_budget_bytes):
    """Return (tile_rows, rows_padded).

    tile_rows == rows means a single full-array block (no alignment
    constraint, no padding, no extra HBM passes) — the common case for the
    tiny RAT-SPN node-vector activations.  Otherwise tile_rows is a
    sublane-aligned row count whose lane-padded block is ~block_budget_bytes.
    """
    itemsize = jnp.dtype(dtype).itemsize
    sub = _sublane_pack(dtype)
    bytes_per_row = max(_round_up(feat, _LANES), _LANES) * itemsize
    budget_rows = max(sub, (block_budget_bytes // bytes_per_row) // sub * sub)
    if rows <= budget_rows:
        return rows, rows  # one maximal block
    tile_rows = budget_rows
    return tile_rows, _round_up(rows, tile_rows)


def _node_vector_kernel(x_ref, o_ref):
    # Concrete node-vector subclasses (Sum/Product) put their log-space math
    # here on the (rows, features) VMEM tile; the feature/children axis stays
    # the trailing (lane) axis so lane reductions / MXU matmuls apply.
    # The abstract base class has no computation: pure pass-through.
    o_ref[...] = x_ref[...]


class NodeVector:
    """Abstract RAT-SPN node vector (JAX/Pallas port of the PyTorch class)."""

    def __init__(self, name):
        self.name = name

    def __hash__(self):
        return hash(self.name)

    def __eq__(self, other):
        # Same semantics as the PyTorch class (name comparison).
        return self.name == getattr(other, "name", None)

    def init_params(self, init_fn=None):
        # Abstract base class: no parameters to initialize.
        pass

    def __call__(self, x):
        # Abstract base class does no math: returning x is free — no
        # HBM->VMEM->HBM round trip for an identity.
        return x

    # ----- Pallas scaffold used by the concrete subclasses -----------------
    def pallas_forward(self, x, *, pad_value=0.0, block_budget_bytes=None):
        """Stream x through `_node_vector_kernel` with dtype-scaled ~4 MiB
        blocks (identity for the abstract base class).

        `pad_value` is only used when the leading (row) axis must be padded to
        a tile multiple; concrete log-space subclasses should pass their
        reduction identity (e.g. -inf for logsumexp) instead of 0.
        """
        orig_shape, dtype = x.shape, x.dtype
        if x.size == 0:
            return x

        # Layout contract: keep the trailing feature/children axis as the
        # explicit lane dimension; collapse all leading axes into rows.
        if x.ndim < 2:
            x2 = x.reshape(1, -1)
        else:
            x2 = x.reshape(-1, orig_shape[-1])
        rows, feat = x2.shape

        vmem_cap = _vmem_capacity_bytes()
        # in + out, double-buffered => 4 live blocks; keep them well inside
        # physical VMEM on every generation, with ~4 MiB blocks as the target.
        budget = int(block_budget_bytes or min(4 << 20, vmem_cap // 8))
        tile_rows, rows_padded = _plan_tiling(rows, feat, dtype, budget)

        did_pad = rows_padded != rows
        if did_pad:
            # TODO(synk): Sum/Product subclasses must pad with their log-space
            # reduction identity (via pad_value), not 0.
            x2 = jnp.pad(x2, ((0, rows_padded - rows), (0, 0)),
                         constant_values=pad_value)

        grid = (rows_padded // tile_rows,)
        vmem_limit = int(min(vmem_cap, max(16 << 20, 4 * budget + (4 << 20))))

        call_kwargs = {}
        if did_pad:
            # The padded slab is a fresh buffer — safe to donate (saves the
            # output HBM allocation).  Without padding, x2 may alias the
            # caller's array, so we must not donate it.
            call_kwargs["input_output_aliases"] = {0: 0}

        out = pl.pallas_call(
            _node_vector_kernel,
            out_shape=jax.ShapeDtypeStruct((rows_padded, feat), dtype),
            grid=grid,
            in_specs=[pl.BlockSpec((tile_rows, feat), lambda i: (i, 0))],
            out_specs=pl.BlockSpec((tile_rows, feat), lambda i: (i, 0)),
            compiler_params=pltpu.CompilerParams(
                dimension_semantics=("parallel",),
                vmem_limit_bytes=vmem_limit,
            ),
            **call_kwargs,
        )(x2)

        if did_pad:
            out = out[:rows]
        return out.reshape(orig_shape)


if __name__ == "__main__":
    key = jax.random.PRNGKey(0)
    # Small shapes consistent with a RAT-SPN node-vector activation:
    # batch=8, features=32 (e.g. num_dists * num_scopes flattened).
    x = jax.random.normal(key, (8, 32), dtype=jnp.float32)

    node = NodeVector("root_node_vector")
    node.init_params()

    # Abstract base class forward: zero-cost identity (no device round trip).
    y_fast = node(x)

    # Pallas scaffold: single full-array block, no padding, no extra slices.
    y = jax.block_until_ready(node.pallas_forward(x))
    assert y.shape == x.shape and y.dtype == x.dtype
    assert bool(jnp.array_equal(y, x)), "identity pass-through mismatch"
    assert bool(jnp.array_equal(y, y_fast))

    # Ragged, sub-32-bit dtype: conforming single block, no pad, no slice.
    xb = jax.random.normal(jax.random.PRNGKey(1), (5, 37)).astype(jnp.bfloat16)
    yb = jax.block_until_ready(node.pallas_forward(xb))
    assert yb.shape == xb.shape and yb.dtype == xb.dtype
    assert bool(jnp.array_equal(yb, xb)), "bf16 pass-through mismatch"

    # 3-D activation (regions x batch x dists): leading axes collapse to rows,
    # trailing feature axis stays the lane dimension.
    xc = jax.random.normal(jax.random.PRNGKey(2), (2, 4, 32), dtype=jnp.float32)
    yc = jax.block_until_ready(node.pallas_forward(xc))
    assert yc.shape == xc.shape and bool(jnp.array_equal(yc, xc))

    # Multi-block streaming path (small shape, artificially small budget so
    # the grid has several steps) — exercises tiling without padding.
    xd = jax.random.normal(jax.random.PRNGKey(3), (512, 128), dtype=jnp.float32)
    yd = jax.block_until_ready(node.pallas_forward(xd, block_budget_bytes=64 << 10))
    assert bool(jnp.array_equal(yd, xd)), "multi-block pass-through mismatch"

    # Multi-block + ragged rows — exercises the pad / donate / slice path.
    xe = jax.random.normal(jax.random.PRNGKey(4), (300, 40), dtype=jnp.float32)
    ye = jax.block_until_ready(node.pallas_forward(xe, block_budget_bytes=64 << 10))
    assert ye.shape == xe.shape and bool(jnp.array_equal(ye, xe))

    print("KERNEL_OK")
</pallas_src>

<mosaic_0001>
module attributes {stable_mosaic.version = 11 : i64} {
  func.func @_node_vector_kernel(%arg0: i32, %arg1: memref<8x32xf32, #tpu.memory_space<vmem>>, %arg2: memref<8x32xf32, #tpu.memory_space<vmem>>) attributes {dimension_semantics = [#tpu.dimension_semantics<parallel>], iteration_bounds = array<i64: 1>, scalar_prefetch = 0 : i64, scratch_operands = 0 : i64, tpu.core_type = #tpu.core_type<tc>, window_params = [{transform_indices = @transform_0, window_bounds = array<i64: 8, 32>}, {transform_indices = @transform_1, window_bounds = array<i64: 8, 32>}]} {
    %c0 = arith.constant 0 : index
    %c0_0 = arith.constant 0 : index
    %0 = vector.load %arg1[%c0, %c0_0] : memref<8x32xf32, #tpu.memory_space<vmem>>, vector<8x32xf32>
    %c0_1 = arith.constant 0 : index
    %c0_2 = arith.constant 0 : index
    %1 = vector.load %arg2[%c0_1, %c0_2] : memref<8x32xf32, #tpu.memory_space<vmem>>, vector<8x32xf32>
    tpu.vector_store %arg2[%c0_1, %c0_2], %0 {strides = array<i32>} : memref<8x32xf32, #tpu.memory_space<vmem>>, vector<8x32xf32>,
    return
  }
  func.func @transform_0(%arg0: i32) -> (i32, i32) {
    %c0_i32 = arith.constant 0 : i32
    %c0_i32_0 = arith.constant 0 : i32
    return %arg0, %c0_i32 : i32, i32
  }
  func.func @transform_1(%arg0: i32) -> (i32, i32) {
    %c0_i32 = arith.constant 0 : i32
    %c0_i32_0 = arith.constant 0 : i32
    return %arg0, %c0_i32 : i32, i32
  }
}

</mosaic_0001>

<bundles_post_ra>
// kernel: tpu_custom_call.1
= control target key start
LH: loop header
LB: loop body
LE: loop exit
PB: predicated region body
PF: predicated region fallthrough
CT: control target
= control target key end

     0   :  { %6 = vsyncpa [#allocation3], 0  ;;  %s103_s0 = inlined_call_operand.hbm [shape: f32[8,32], index: 0, kind: input, shape index: {}]   ;;  %s104_s1 = inlined_call_operand.hbm [shape: f32[8,32], index: 1, kind: output, shape index: {}]  }
   0x1   :  { %7 = vsyncpa [#allocation4], 0  ;;  %s85_s6 = smov [#allocation2]  }
   0x2   :  { %s14_s7 = sshll.u32 %s85_s6, 4  ;;  %s15_s7 = int_to_ptr.vmem [resolvable:$true] %s14_s7 }
   0x3   :  { %s49_s8 = scalar_lea.vmem %s15_s7, 128  ;;  %p54_p1 = scmp.lt.s32.totalorder %s15_s7, %s15_s7 }
   0x4   :  { %p50_p0 = scmp.ne.s32.totalorder %s15_s7, %s49_s8  ;;  %p55_p2 = scmp.lt.s32.totalorder %s49_s8, %s49_s8 }
   0x6   :  { %p56_p3 = por %p55_p2, %p54_p1 }
   0x8   :  { %p57_p4 = pnand %p56_p3, %p50_p0 }
   0xa   :  { %60 = shalt.err (!%p57_p4)
}
   0xb   :  { %17 = dma.hbm_to_vmem [thread:$0]  %s103_s0, 128, %s15_s7, [#allocation3]  }
   0xc   :  { %81 = dma.done.wait [#allocation3], 128  }
   0xd   :  { %82 = vsyncadd [#allocation3], 4294967168  ;;  %s86_s11 = smov [#allocation5]   ;;  %vm22_vm0 = vcmask 261120   ;;  %v21_v0 = vld [vmem:[#allocation2] sm:$0xff] }
   0xe   :  { %s30_s12 = sshll.u32 %s86_s11, 4  ;;  %23 = vst.msk [vmem:[#allocation5] sm:$0xff] %vm22_vm0, %v21_v0  ;;  %s31_s12 = int_to_ptr.vmem [resolvable:$true] %s30_s12 }
   0xf   :  { %s61_s13 = scalar_lea.vmem %s31_s12, 128  ;;  %p66_p6 = scmp.lt.s32.totalorder %s31_s12, %s31_s12 }
  0x10   :  { %p62_p5 = scmp.ne.s32.totalorder %s31_s12, %s61_s13  ;;  %p67_p7 = scmp.lt.s32.totalorder %s61_s13, %s61_s13 }
  0x12   :  { %p68_p8 = por %p67_p7, %p66_p6 }
  0x14   :  { %p69_p9 = pnand %p68_p8, %p62_p5 }
  0x16   :  { %72 = shalt.err (!%p69_p9)
}
  0x17   :  { %33 = dma.vmem_to_hbm [thread:$0]  %s31_s12, 128, %s104_s1, [#allocation4]  }
  0x18   :  { %83 = dma.done.wait [#allocation4], 128  }
  0x19   :  { %84 = vsyncadd [#allocation4], 4294967168 }
  0x1a   :  { %37 = vsyncpa [#allocation3], 1 }
  0x1b   :  { %38 = vsyncpa [#allocation4], 1 }

</bundles_post_ra>
